<compile_context>
chip_gen: v7x
topology: tpu7x:2x2x1
jax: 0.10.0
libtpu: 0.0.40
codegen_flags: <defaults>
</compile_context>

<pallas_src>
import functools

import jax
import jax.numpy as jnp
from jax.experimental import pallas as pl
from jax.experimental.pallas import tpu as pltpu


def _gconv_kernel(adj_ref, hw_ref, b_ref, o_ref, *scratch,
                  use_relu, hw_resident, tk):
    """Grid (N_m//tm, N_k//tk); axis 1 is the reduction over source-node tiles.

    Accumulates adj_tile @ hw_tile; bias + ReLU fused at the final k step.
    If no scratch is passed, o_ref (f32, resident across k) is the accumulator.
    """
    k = pl.program_id(1)
    acc_ref = scratch[0] if scratch else o_ref

    @pl.when(k == 0)
    def _():
        acc_ref[...] = jnp.zeros_like(acc_ref)

    if hw_resident:
        # hw lives fully in VMEM (constant index_map -> DMA'd once); slice the
        # current reduction block. tk is a multiple of 128 -> aligned slice.
        start = pl.multiple_of(k * tk, 128)
        hw_blk = hw_ref[pl.ds(start, tk), :]
    else:
        hw_blk = hw_ref[...]

    acc_ref[...] += jnp.dot(adj_ref[...], hw_blk,
                            preferred_element_type=jnp.float32)

    @pl.when(k == pl.num_programs(1) - 1)
    def _():
        y = acc_ref[...] + b_ref[...]
        if use_relu:
            y = jnp.maximum(y, 0.0)
        o_ref[...] = y.astype(o_ref.dtype)


def _round_up(x, m):
    return ((x + m - 1) // m) * m


def _vmem_budget_bytes():
    """~75% of per-core VMEM: ≈96 MiB on v5e/v6e (128 MiB), ≈48 MiB on v7x (64 MiB)."""
    try:
        cap = int(pltpu.get_tpu_info().vmem_capacity_bytes)
    except Exception:
        cap = 64 << 20  # conservative (v7x-sized) fallback
    return (cap * 3) // 4


def gconv_forward(adj, h, weight, bias, *, activation="relu", tm=None, tk=None):
    """adj: [N, N] (dense, in the dtype you want streamed), h: [N, F_in],
    weight: [F_out, F_in] (torch Linear layout), bias: [F_out].  Returns [N, F_out]."""
    if activation not in (None, "none", "relu"):
        raise ValueError(f"unsupported activation: {activation!r}")
    use_relu = activation == "relu"

    N = adj.shape[0]
    assert adj.shape == (N, N)
    f_out = weight.shape[0]

    compute_dtype = adj.dtype          # stream adj as provided (no per-call recast)
    out_dtype = h.dtype
    acc_in_out = jnp.dtype(out_dtype) == jnp.float32   # accumulate directly in o_ref

    # Lane-dense output: pad F_out to a multiple of 128 with zero columns.
    f_out_pad = max(128, _round_up(f_out, 128))
    w_t = weight.astype(jnp.float32).T                       # (F_in, F_out)
    b2d = bias.astype(jnp.float32).reshape(1, f_out)
    if f_out_pad != f_out:
        w_t = jnp.pad(w_t, ((0, 0), (0, f_out_pad - f_out)))
        b2d = jnp.pad(b2d, ((0, 0), (0, f_out_pad - f_out)))

    # Hoisted tiny projection: hw = h @ W^T (f32), narrowed to the adj stream dtype.
    hw = jnp.dot(h.astype(jnp.float32), w_t,
                 preferred_element_type=jnp.float32).astype(compute_dtype)

    # --- tile / VMEM selection -------------------------------------------------
    budget = _vmem_budget_bytes()
    big_vmem = budget >= (80 << 20)                 # v5e / v6e class
    tm_cap = 1024 if big_vmem else 512
    tk_cap = 2048 if big_vmem else 1024

    adj_isz = jnp.dtype(compute_dtype).itemsize
    out_isz = jnp.dtype(out_dtype).itemsize

    if tm is None:
        tm = max(16, (min(tm_cap, _round_up(N, 16)) // 16) * 16)
        # keep >= 2 row tiles so the "parallel" i axis can split across megacore TCs
        if _round_up(N, tm) // tm < 2 and N > 16:
            tm = max(16, _round_up((N + 1) // 2, 16))
    if tk is None:
        tk = max(128, (min(tk_cap, _round_up(N, 128)) // 128) * 128)
    assert tm % 16 == 0 and tk % 128 == 0

    def _est(tm_, tk_, resident, n_k_):
        e = 2 * tm_ * tk_ * adj_isz                                  # adj (dbl-buffered)
        e += 2 * (n_k_ if resident else tk_) * f_out_pad * adj_isz   # hw
        e += 2 * f_out_pad * 4                                       # bias
        e += 2 * tm_ * f_out_pad * out_isz                           # output
        if not acc_in_out:
            e += tm_ * f_out_pad * 4                                 # f32 acc scratch
        return e

    while True:
        n_k = _round_up(N, tk)
        hw_resident = (n_k * f_out_pad * adj_isz) <= (budget // 4)
        if _est(tm, tk, hw_resident, n_k) <= budget or (tm <= 16 and tk <= 128):
            break
        if tk > 128:
            tk = max(128, (tk // 2 // 128) * 128)
        else:
            tm = max(16, (tm // 2 // 16) * 16)

    N_m = _round_up(N, tm)
    N_k = _round_up(N, tk)
    if (N_m, N_k) != (N, N):
        adj = jnp.pad(adj, ((0, N_m - N), (0, N_k - N)))
    if N_k != N:
        hw = jnp.pad(hw, ((0, N_k - N), (0, 0)))

    grid = (N_m // tm, N_k // tk)

    if hw_resident:
        hw_spec = pl.BlockSpec((N_k, f_out_pad), lambda i, k: (0, 0))   # DMA'd once
    else:
        hw_spec = pl.BlockSpec((tk, f_out_pad), lambda i, k: (k, 0))

    kernel = functools.partial(_gconv_kernel, use_relu=use_relu,
                               hw_resident=hw_resident, tk=tk)
    scratch = [] if acc_in_out else [pltpu.VMEM((tm, f_out_pad), jnp.float32)]

    out = pl.pallas_call(
        kernel,
        out_shape=jax.ShapeDtypeStruct((N_m, f_out_pad), out_dtype),
        grid_spec=pltpu.PrefetchScalarGridSpec(
            num_scalar_prefetch=0,
            grid=grid,
            in_specs=[
                pl.BlockSpec((tm, tk), lambda i, k: (i, k)),          # adj tile (dominant)
                hw_spec,                                              # projected features
                pl.BlockSpec((1, f_out_pad), lambda i, k: (0, 0)),    # bias
            ],
            out_specs=pl.BlockSpec((tm, f_out_pad), lambda i, k: (i, 0)),
            scratch_shapes=scratch,
        ),
        compiler_params=pltpu.CompilerParams(
            dimension_semantics=("parallel", "arbitrary"),
            vmem_limit_bytes=int(budget),
        ),
    )(adj, hw, b2d)

    return out[:N, :f_out]


if __name__ == "__main__":
    # Small, deterministic synthetic problem.
    N = 256        # number of graph nodes
    F_IN = 32      # input_dim
    F_OUT = 64     # output_dim

    key = jax.random.PRNGKey(0)
    k_adj, k_h, k_w, k_b = jax.random.split(key, 4)

    # Dense "adjacency": random sparse-ish nonnegative matrix, row-normalized.
    raw = jax.random.uniform(k_adj, (N, N), dtype=jnp.float32)
    mask = (raw > 0.9).astype(jnp.float32)            # ~10% density
    adj = mask * raw
    adj = adj / jnp.maximum(adj.sum(axis=1, keepdims=True), 1e-6)
    # Single-use adjacency -> stream it in f32 directly (no per-call cast pass).
    # For a multi-layer GNN, cast/persist adj to bf16 ONCE outside the layer loop.

    h = jax.random.normal(k_h, (N, F_IN), dtype=jnp.float32)

    # nn.Linear(F_IN, F_OUT) init: U(-1/sqrt(F_IN), 1/sqrt(F_IN)) for W and b.
    bound = 1.0 / (F_IN ** 0.5)
    weight = jax.random.uniform(
        k_w, (F_OUT, F_IN), minval=-bound, maxval=bound, dtype=jnp.float32
    )
    bias = jax.random.uniform(
        k_b, (F_OUT,), minval=-bound, maxval=bound, dtype=jnp.float32
    )

    out = gconv_forward(adj, h, weight, bias, activation="relu")
    out = jax.block_until_ready(out)

    # Pure-JAX reference for correctness (default TPU matmul precision -> relaxed tol).
    ref = jnp.maximum((adj @ h) @ weight.T + bias, 0.0)
    assert out.shape == (N, F_OUT)
    assert jnp.allclose(out, ref, atol=2e-2, rtol=2e-2), "mismatch vs reference"

    print("KERNEL_OK")
</pallas_src>

<mosaic_0001>
module attributes {stable_mosaic.version = 11 : i64} {
  func.func @_gconv_kernel(%arg0: i32, %arg1: i32, %arg2: memref<128x256xf32, #tpu.memory_space<vmem>>, %arg3: memref<256x128xf32, #tpu.memory_space<vmem>>, %arg4: memref<1x128xf32, #tpu.memory_space<vmem>>, %arg5: memref<128x128xf32, #tpu.memory_space<vmem>>) attributes {dimension_semantics = [#tpu.dimension_semantics<parallel>, #tpu.dimension_semantics<arbitrary>], iteration_bounds = array<i64: 2, 1>, scalar_prefetch = 0 : i64, scratch_operands = 0 : i64, tpu.core_type = #tpu.core_type<tc>, window_params = [{transform_indices = @transform_0, window_bounds = array<i64: 128, 256>}, {pipeline_mode = #tpu.pipeline_mode<synchronous>, transform_indices = @transform_1, window_bounds = array<i64: 256, 128>}, {pipeline_mode = #tpu.pipeline_mode<synchronous>, transform_indices = @transform_2, window_bounds = array<i64: 1, 128>}, {transform_indices = @transform_3, window_bounds = array<i64: 128, 128>}]} {
    %c0_i32 = arith.constant 0 : i32
    %0 = arith.cmpi eq, %arg1, %c0_i32 : i32
    %1 = arith.extui %0 : i1 to i32
    %c0_i32_0 = arith.constant 0 : i32
    %2 = arith.cmpi ne, %1, %c0_i32_0 : i32
    scf.if %2 {
      %cst_9 = arith.constant 0.000000e+00 : f32
      %15 = vector.broadcast %cst_9 : f32 to vector<128x128xf32>
      %c0_10 = arith.constant 0 : index
      %c0_11 = arith.constant 0 : index
      %16 = vector.load %arg5[%c0_10, %c0_11] : memref<128x128xf32, #tpu.memory_space<vmem>>, vector<128x128xf32>
      tpu.vector_store %arg5[%c0_10, %c0_11], %15 {strides = array<i32>} : memref<128x128xf32, #tpu.memory_space<vmem>>, vector<128x128xf32>,
    } else {
    }
    %c256_i32 = arith.constant 256 : i32
    %3 = arith.muli %arg1, %c256_i32 : i32
    %4 = tpu.assume_multiple %3, 128 : i32
    %5 = arith.index_cast %4 : i32 to index
    %c0 = arith.constant 0 : index
    %6 = vector.load %arg3[%5, %c0] : memref<256x128xf32, #tpu.memory_space<vmem>>, vector<256x128xf32>
    %c0_1 = arith.constant 0 : index
    %c0_2 = arith.constant 0 : index
    %7 = vector.load %arg5[%c0_1, %c0_2] : memref<128x128xf32, #tpu.memory_space<vmem>>, vector<128x128xf32>
    %c0_3 = arith.constant 0 : index
    %c0_4 = arith.constant 0 : index
    %8 = vector.load %arg2[%c0_3, %c0_4] : memref<128x256xf32, #tpu.memory_space<vmem>>, vector<128x256xf32>
    %cst = arith.constant dense<0.000000e+00> : vector<128x128xf32>
    %9 = tpu.matmul %8, %6, %cst {dimension_numbers = #tpu.dot_dimension_numbers<[1], [0], [0], [1], [0, 0, 1, 1], [], []>} : vector<128x256xf32>, vector<256x128xf32>, vector<128x128xf32> -> vector<128x128xf32>
    %10 = arith.addf %7, %9 : vector<128x128xf32>
    %c0_5 = arith.constant 0 : index
    %c0_6 = arith.constant 0 : index
    %11 = vector.load %arg5[%c0_5, %c0_6] : memref<128x128xf32, #tpu.memory_space<vmem>>, vector<128x128xf32>
    tpu.vector_store %arg5[%c0_5, %c0_6], %10 {strides = array<i32>} : memref<128x128xf32, #tpu.memory_space<vmem>>, vector<128x128xf32>,
    %c0_i32_7 = arith.constant 0 : i32
    %12 = arith.cmpi eq, %arg1, %c0_i32_7 : i32
    %13 = arith.extui %12 : i1 to i32
    %c0_i32_8 = arith.constant 0 : i32
    %14 = arith.cmpi ne, %13, %c0_i32_8 : i32
    scf.if %14 {
      %c0_9 = arith.constant 0 : index
      %c0_10 = arith.constant 0 : index
      %15 = vector.load %arg5[%c0_9, %c0_10] : memref<128x128xf32, #tpu.memory_space<vmem>>, vector<128x128xf32>
      %c0_11 = arith.constant 0 : index
      %c0_12 = arith.constant 0 : index
      %16 = vector.load %arg4[%c0_11, %c0_12] : memref<1x128xf32, #tpu.memory_space<vmem>>, vector<1x128xf32>
      %17 = vector.broadcast %16 : vector<1x128xf32> to vector<128x128xf32>
      %18 = arith.addf %15, %17 : vector<128x128xf32>
      %cst_13 = arith.constant 0.000000e+00 : f32
      %19 = vector.broadcast %cst_13 : f32 to vector<128x128xf32>
      %20 = arith.maximumf %18, %19 : vector<128x128xf32>
      %c0_14 = arith.constant 0 : index
      %c0_15 = arith.constant 0 : index
      %21 = vector.load %arg5[%c0_14, %c0_15] : memref<128x128xf32, #tpu.memory_space<vmem>>, vector<128x128xf32>
      tpu.vector_store %arg5[%c0_14, %c0_15], %20 {strides = array<i32>} : memref<128x128xf32, #tpu.memory_space<vmem>>, vector<128x128xf32>,
    } else {
    }
    return
  }
  func.func @transform_0(%arg0: i32, %arg1: i32) -> (i32, i32) {
    %c0_i32 = arith.constant 0 : i32
    return %arg0, %arg1 : i32, i32
  }
  func.func @transform_1(%arg0: i32, %arg1: i32) -> (i32, i32) {
    %c0_i32 = arith.constant 0 : i32
    %c0_i32_0 = arith.constant 0 : i32
    %c0_i32_1 = arith.constant 0 : i32
    return %c0_i32, %c0_i32_0 : i32, i32
  }
  func.func @transform_2(%arg0: i32, %arg1: i32) -> (i32, i32) {
    %c0_i32 = arith.constant 0 : i32
    %c0_i32_0 = arith.constant 0 : i32
    %c0_i32_1 = arith.constant 0 : i32
    return %c0_i32, %c0_i32_0 : i32, i32
  }
  func.func @transform_3(%arg0: i32, %arg1: i32) -> (i32, i32) {
    %c0_i32 = arith.constant 0 : i32
    %c0_i32_0 = arith.constant 0 : i32
    return %arg0, %c0_i32 : i32, i32
  }
}

</mosaic_0001>

<bundles_post_ra>
// kernel: tpu_custom_call.1
= control target key start
LH: loop header
LB: loop body
LE: loop exit
PB: predicated region body
PF: predicated region fallthrough
CT: control target
= control target key end

     0   :  { %8 = vsyncpa [#allocation3], 0  ;;  %s1386_s0 = inlined_call_operand.hbm [shape: f32[256,256], index: 0, kind: input, shape index: {}]   ;;  %s1387_s1 = inlined_call_operand.hbm [shape: f32[256,128], index: 1, kind: input, shape index: {}]   ;;  %s1388_s2 = inlined_call_operand.vmem [shape: f32[1,128], index: 2, kind: input, shape index: {}]   ;;  %s1389_s3 = inlined_call_operand.hbm [shape: f32[256,128], index: 3, kind: output, shape index: {}]  }
   0x1   :  { %10 = vsyncpa [#allocation3 + $0x1], 0 }
   0x2   :  { %11 = vsyncpa [#allocation6], 0 }
   0x3   :  { %12 = vsyncpa [#allocation4], 0 }
   0x4   :  { %14 = vsyncpa [#allocation4 + $0x1], 0  ;;  %s1092_s12 = smov 0   ;;  %s1094_s13 = smov 0  }
   0x5   :  { %s1096_s14 = smov 0   ;;  %s1098_s15 = smov 0  }
   0x6   :  { %s1100_s16 = smov 0   ;;  %s1102_s17 = smov 0  }
   0x7 LB: > { %s687_s18 = sadd.s32 4294967295, %s1061_s17   ;;  %s688_s19 = sadd.s32 4294967294, %s1061_s17   ;;  %s1061_s17 = sphi %s1102_s17, %s20_s17   ;;  %s1057_s16 = sphi %s1100_s16, %s1413_s16   ;;  %s1053_s15 = sphi %s1098_s15, %s1412_s15   ;;  %s1049_s14 = sphi %s1096_s14, %s1411_s14   ;;  %s1045_s13 = sphi %s1094_s13, %s1410_s13   ;;  %s1041_s12 = sphi %s1092_s12, %s1409_s12  }
   0x8   : > { %p54_p0 = scmp.ne.s32.totalorder %s1045_s13, %s1041_s12  ;;  %p1126_p1 = scmp.eq.s32.totalorder %s687_s18, 0 }
   0x9   : > { %p1130_p2 = scmp.eq.s32.totalorder %s687_s18, 1  ;;  %p126_p3 = scmp.eq.s32.totalorder %s688_s19, 1 }
   0xa   : > { %s1394_s20 = scalar_select %p1126_p1, 1, 0 }
   0xb   : > { %s1395_s21 = scalar_select %p1130_p2, 1, 0 }
   0xc   : > { %p1136_p4 = por %p1126_p1, %p54_p0  ;;  %p689_p5 = scmp.ge.s32.totalorder %s1061_s17, 1 }
   0xd   : > { %p1141_p6 = por %p126_p3, %p54_p0  ;;  %p133_p7 = scmp.lt.s32.totalorder %s1061_s17, 3 }
   0xe   : > { %s1396_s22 = scalar_select %p1136_p4, 1, 0 }
   0xf   : > { %s1397_s23 = scalar_select %p1141_p6, 1, 0 }
  0x10   : > { %p1146_p8 = pnand %p689_p5, %p133_p7  ;;  %s1063_s25 = smov [#allocation5]  }
  0x11   : > { %s145_s26 = sshll.u32 %s1063_s25, 4  ;;  %s32_s28 = sadd.s32 1, %s1057_s16  ;;  %s146_s26 = int_to_ptr.vmem [resolvable:$true] %s145_s26 }
  0x12   : > { %s1398_s24 = scalar_select %p1146_p8, 1, 0 }
  0x13   : > { %p845_p9 = pneg %p1146_p8  ;;  %s917_s4 = scalar_lea.hbm %s1387_s1, 4096 }
  0x14   : > { %p918_p12 = scmp.ne.s32.totalorder %s1387_s1, %s917_s4  ;;  %p924_p5 = scmp.lt.u32.totalorder %s917_s4, %s1387_s1 }
  0x15   : > { %p1155_p11 = pnand %p845_p9, %p1126_p1 }
  0x17   : > { %p919_p13 = pneg %p1155_p11 }
  0x19   : > { %p920_p0 = pnand %p919_p13, %p918_p12 }
  0x1b   : > { %p921_p3 = pneg %p920_p0 }
  0x1d   : > { %p926_p7 = pnand %p924_p5, %p921_p3 }
  0x1f   : > { %929 = shalt.err (!%p926_p7)
}
  0x20   : > { %s930_s9 = scalar_lea.vmem %s146_s26, 4096  ;;  %p938_p1 = scmp.lt.s32.totalorder %s146_s26, %s146_s26 }
  0x21   : > { %p931_p9 = scmp.ne.s32.totalorder %s146_s26, %s930_s9  ;;  %p939_p4 = scmp.lt.s32.totalorder %s930_s9, %s930_s9 }
  0x23   : > { %p933_p10 = pnand %p931_p9, %p919_p13  ;;  %p940_p8 = por %p939_p4, %p938_p1 }
  0x25   : > { %p934_p6 = pneg %p933_p10 }
  0x27   : > { %p941_p2 = pnand %p940_p8, %p934_p6 }
  0x29   : > { %944 = shalt.err (!%p941_p2)
}
  0x2a   : > { %s1064_s10 = smov 128   ;;  %s1065_s11 = smov 8  }
  0x2b   : > { %848 = dma.hbm_to_vmem [thread:$0]  (!%p1155_p11), %s1387_s1, 4096, %s146_s26, [#allocation6], %s1064_s10, %s1064_s10, %s1065_s11  }
  0x2c   : > { %p34_p1 = scmp.ge.s32.totalorder %s32_s28, 2  ;;  %s41_s25 = sadd.s32 1, %s1049_s14 }
  0x2d   : > { %p48_p2 = scmp.ne.s32.totalorder %s1049_s14, %s1045_s13  ;;  %p49_p4 = scmp.eq.s32.totalorder %s1061_s17, 0 }
  0x2e   : > { %s1415_s28 = smov (%p34_p1, %s32_s28), 0  ;;  %p1401_p8 = scmp.ne.s32.totalorder %s1395_s21, 0 }
  0x2f   : > { %p1182_p6 = por %p49_p4, %p48_p2  ;;  %s36_s27 = ssub.s32 %s1057_s16, %s1415_s28 }
  0x30   : > { %p1188_p10 = por %p1401_p8, %p48_p2  ;;  %p858_p12 = scmp.lt.s32.totalorder %s1061_s17, 2 }
  0x31   : > { %p39_p11 = scmp.eq.s32.totalorder %s36_s27, 0  ;;  %s162_s26 = sand.u32 1, %s1049_s14  }
  0x32   : > { %s692_s4 = sshll.u32 %s162_s26, 8  ;;  %s707_s6 = sshll.u32 %s1057_s16, 12 }
  0x33   : > { %s1197_s5 = scalar_select %p39_p11, %s1049_s14, %s41_s25  }
  0x34   : > { %s1203_s9 = scalar_lea.hbm %s1386_s0, %s707_s6  ;;  %s166_s21 = scalar_lea.vmem [#allocation2], %s692_s4 }
  0x35   : > { %s176_s10 = sshll.u32 %s166_s21, 4  ;;  %p1209_p13 = pnand %p858_p12, %p1182_p6  ;;  %s1205_s10 = int_to_ptr.vmem [resolvable:$true] %s176_s10 }
  0x36   : > { %s1213_s18 = scalar_lea.sflag [#allocation3], %s162_s26  ;;  %s945_s19 = scalar_lea.hbm %s1203_s9, 4096 }
  0x37   : > { %p946_p0 = scmp.ne.s32.totalorder %s1203_s9, %s945_s19  ;;  %p947_p3 = pneg %p1209_p13 }
  0x38   : > { %s950_s29 = scalar_lea.hbm %s1386_s0, 8192  ;;  %p951_p9 = scmp.lt.u32.totalorder %s1203_s9, %s1386_s0 }
  0x39   : > { %p948_p5 = pnand %p947_p3, %p946_p0  ;;  %p952_p1 = scmp.lt.u32.totalorder %s950_s29, %s945_s19 }
  0x3a   : > { %p954_p4 = scmp.lt.u32.totalorder %s945_s19, %s1203_s9 }
  0x3b   : > { %p949_p7 = pneg %p948_p5  ;;  %p953_p2 = por %p952_p1, %p951_p9 }
  0x3d   : > { %p955_p6 = por %p954_p4, %p953_p2 }
  0x3f   : > { %p956_p8 = pnand %p955_p6, %p949_p7 }
  0x41   : > { %959 = shalt.err (!%p956_p8)
}
  0x42   : > { %s960_s26 = scalar_lea.vmem %s1205_s10, 4096  ;;  %s1066_s7 = smov [#allocation2]  }
  0x43   : > { %p961_p12 = scmp.ne.s32.totalorder %s1205_s10, %s960_s26  ;;  %s965_s8 = sshll.u32 %s1066_s7, 4  ;;  %s966_s8 = int_to_ptr.vmem [resolvable:$false] %s965_s8 }
  0x44   : > { %s967_s21 = scalar_lea.vmem %s966_s8, 8192  ;;  %p968_p5 = scmp.lt.s32.totalorder %s1205_s10, %s966_s8 }
  0x45   : > { %p963_p11 = pnand %p961_p12, %p947_p3  ;;  %p969_p9 = scmp.lt.s32.totalorder %s967_s21, %s960_s26 }
  0x47   : > { %p964_p0 = pneg %p963_p11  ;;  %p970_p1 = por %p969_p9, %p968_p5 }
  0x49   : > { %p971_p2 = pnand %p970_p1, %p964_p0 }
  0x4b   : > { %974 = shalt.err (!%p971_p2)
}
  0x4c   : > { %s1067_s19 = smov 256   ;;  %s1068_s25 = smov 16  }
  0x4d   : > { %852 = dma.hbm_to_vmem [thread:$0]  (!%p1209_p13), %s1203_s9, 4096, %s1205_s10, %s1213_s18, %s1067_s19, %s1067_s19, %s1068_s25  }
  0x4e   : > { %p1404_p3 = scmp.ne.s32.totalorder %s1398_s24, 0 }
  0x4f   : > { %s1244_s27 = sand.u32 (!%p1404_p3), 1, %s1045_s13   ;;  %p1405_p7 = scmp.ne.s32.totalorder (!%p1404_p3), %s1396_s22, 0 }
  0x50   : > { %188 = sbr.rel (%p1404_p3) target bundleno = 388 (0x184), region = 32  ;;  %s697_s29 = sshll.u32 (!%p1404_p3), %s1244_s27, 8 }
  0x51   : > { %s191_s4 = scalar_lea.sflag (!%p1404_p3), [#allocation3], %s1244_s27  ;;  %s1248_s6 = scalar_lea.vmem (!%p1404_p3), [#allocation2], %s697_s29 }
  0x57   : > { %1028 = dma.done.wait (%p1405_p7), %s191_s4, 4096  }
  0x58   : > { %1030 = vsyncadd (%p1405_p7), %s191_s4, 4294963200  ;;  %p1406_p13 = scmp.ne.s32.totalorder %s1394_s20, 0 }
  0x5a   : > { %1032 = dma.done.wait (%p1406_p13), [#allocation6], 4096  }
  0x5b   : > { %1034 = vsyncadd (%p1406_p13), [#allocation6], 4294963200  ;;  %v262_v0 = vld [vmem:[#allocation5 + $0x80] sm:$0xff]  ;;  %v263_v1 = vld [vmem:[#allocation5 + $0x88] sm:$0xff]  ;;  %s699_s24 = sshll.u32 %s1244_s27, 7  ;;  %s708_s10 = sshll.u32 %s1053_s15, 11 }
  0x5c   : > { %v246_v2 = vld [vmem:[#allocation5] sm:$0xff]  ;;  %v789_v3 = vpack.c.bf16 %v263_v1, %v262_v0  ;;  %v247_v4 = vld [vmem:[#allocation5 + $0x8] sm:$0xff]  ;;  %v264_v5 = vld [vmem:[#allocation5 + $0x90] sm:$0xff]  ;;  %s1298_s9 = scalar_lea.vmem [#allocation7], %s699_s24  ;;  %s1333_s7 = scalar_lea.hbm %s1389_s3, %s708_s10 }
  0x5d   : > { %v265_v6 = vld [vmem:[#allocation5 + $0x98] sm:$0xff]  ;;  %v791_v7 = vpack.c.bf16 %v247_v4, %v246_v2  ;;  %v248_v9 = vld [vmem:[#allocation5 + $0x10] sm:$0xff]  ;;  %v266_v11 = vld [vmem:[#allocation5 + $0xa0] sm:$0xff]  ;;  %s591_s11 = sshll.u32 %s1298_s9, 4  ;;  %s578_s15 = scalar_lea.sflag [#allocation4], %s1244_s27  ;;  %s1335_s11 = int_to_ptr.vmem [resolvable:$true] %s591_s11 }
  0x5e   : > { %v793_v8 = vpack.c.bf16 %v265_v6, %v264_v5  ;;  %v249_v10 = vld [vmem:[#allocation5 + $0x18] sm:$0xff]  ;;  %790 = vmatprep.subr.bf16.mxu0 %v789_v3  ;;  %821 = vmatprep.subr.bf16.mxu1 %v789_v3  ;;  %v267_v12 = vld [vmem:[#allocation5 + $0xa8] sm:$0xff]  ;;  %v250_v15 = vld [vmem:[#allocation5 + $0x20] sm:$0xff]  ;;  %s975_s8 = scalar_lea.vmem %s1335_s11, 2048  ;;  %s1069_s21 = smov [#allocation7]  }
  0x5f   : > { %792 = vmatpush3.bf16.msra.mxu0 %v791_v7  ;;  %829 = vmatpush3.bf16.msra.mxu1 %v791_v7  ;;  %v795_v13 = vpack.c.bf16 %v249_v10, %v248_v9  ;;  %v797_v14 = vpack.c.bf16 %v267_v12, %v266_v11  ;;  %v251_v16 = vld [vmem:[#allocation5 + $0x28] sm:$0xff]  ;;  %v268_v17 = vld [vmem:[#allocation5 + $0xb0] sm:$0xff]  ;;  %v269_v18 = vld [vmem:[#allocation5 + $0xb8] sm:$0xff]  ;;  %p976_p4 = scmp.ne.s32.totalorder %s1335_s11, %s975_s8  ;;  %s979_s19 = sshll.u32 %s1069_s21, 4  ;;  %s980_s19 = int_to_ptr.vmem [resolvable:$false] %s979_s19 }
  0x60   : > { %794 = vmatprep.subr.bf16.mxu0 %v793_v8  ;;  %822 = vmatprep.subr.bf16.mxu1 %v793_v8  ;;  %v799_v19 = vpack.c.bf16 %v251_v16, %v250_v15  ;;  %v801_v20 = vpack.c.bf16 %v269_v18, %v268_v17  ;;  %v252_v21 = vld [vmem:[#allocation5 + $0x30] sm:$0xff]  ;;  %v253_v22 = vld [vmem:[#allocation5 + $0x38] sm:$0xff]  ;;  %v270_v23 = vld [vmem:[#allocation5 + $0xc0] sm:$0xff]  ;;  %s981_s25 = scalar_lea.vmem %s980_s19, 4096  ;;  %p982_p12 = scmp.lt.s32.totalorder %s1335_s11, %s980_s19 }
  0x61   : > { %v271_v24 = vld [vmem:[#allocation5 + $0xc8] sm:$0xff]  ;;  %v803_v27 = vpack.c.bf16 %v253_v22, %v252_v21  ;;  %v254_v29 = vld [vmem:[#allocation5 + $0x40] sm:$0xff]  ;;  %v272_v31 = vld [vmem:[#allocation5 + $0xd0] sm:$0xff]  ;;  %p977_p6 = pnand %p976_p4, %p1188_p10  ;;  %p983_p11 = scmp.lt.s32.totalorder %s981_s25, %s975_s8 }
  0x62   : > { %v295_v25 = vld [vmem:[%s1248_s6 + $0x8] sm:$0xff]  ;;  %v805_v28 = vpack.c.bf16 %v271_v24, %v270_v23  ;;  %v273_v32 = vld [vmem:[#allocation5 + $0xd8] sm:$0xff]  ;;  %v256_v35 = vld [vmem:[#allocation5 + $0x50] sm:$0xff] }
  0x63   : > { %796 = vmatpush3.bf16.msra.mxu0 %v795_v13  ;;  %830 = vmatpush3.bf16.msra.mxu1 %v795_v13  ;;  %v311_v26 = vld [vmem:[%s1248_s6 + $0x88] sm:$0xff]  ;;  %v809_v34 = vpack.c.bf16 %v273_v32, %v272_v31  ;;  %v257_v36 = vld [vmem:[#allocation5 + $0x58] sm:$0xff]  ;;  %v274_v37 = vld [vmem:[#allocation5 + $0xe0] sm:$0xff]  ;;  %p978_p8 = pneg %p977_p6  ;;  %p984_p0 = por %p983_p11, %p982_p12 }
  0x64   : > { %798 = vmatprep.subr.bf16.mxu0 %v797_v14  ;;  %823 = vmatprep.subr.bf16.mxu1 %v797_v14  ;;  %v255_v30 = vld [vmem:[#allocation5 + $0x48] sm:$0xff]  ;;  %v811_v39 = vpack.c.bf16 %v257_v36, %v256_v35  ;;  %v258_v41 = vld [vmem:[#allocation5 + $0x60] sm:$0xff]  ;;  %v276_v43 = vld [vmem:[#allocation5 + $0xf0] sm:$0xff] }
  0x65   : > { %390 = vmatprep.mubr.f32.mxu0 %v295_v25  ;;  %430 = vmatprep.mubr.f32.mxu1 %v311_v26  ;;  %v807_v33 = vpack.c.bf16 %v255_v30, %v254_v29  ;;  %v275_v38 = vld [vmem:[#allocation5 + $0xe8] sm:$0xff]  ;;  %v277_v44 = vld [vmem:[#allocation5 + $0xf8] sm:$0xff]  ;;  %v260_v47 = vld [vmem:[#allocation5 + $0x70] sm:$0xff]  ;;  %p985_p5 = pnand %p984_p0, %p978_p8 }
  0x66   : > { %v813_v40 = vpack.c.bf16 %v275_v38, %v274_v37  ;;  %v259_v42 = vld [vmem:[#allocation5 + $0x68] sm:$0xff]  ;;  %v817_v46 = vpack.c.bf16 %v277_v44, %v276_v43  ;;  %v261_v48 = vld [vmem:[#allocation5 + $0x78] sm:$0xff]  ;;  %v294_v50 = vld [vmem:[%s1248_s6] sm:$0xff] }
  0x67   : > { %800 = vmatpush3.bf16.msra.mxu0 %v799_v19  ;;  %831 = vmatpush3.bf16.msra.mxu1 %v799_v19  ;;  %v815_v45 = vpack.c.bf16 %v259_v42, %v258_v41  ;;  %v819_v49 = vpack.c.bf16 %v261_v48, %v260_v47  ;;  %v310_v51 = vld [vmem:[%s1248_s6 + $0x80] sm:$0xff]  ;;  %v297_v52 = vld [vmem:[%s1248_s6 + $0x18] sm:$0xff]  ;;  %v296_v54 = vld [vmem:[%s1248_s6 + $0x10] sm:$0xff] }
  0x68   : > { %802 = vmatprep.subr.bf16.mxu0 %v801_v20  ;;  %824 = vmatprep.subr.bf16.mxu1 %v801_v20  ;;  %v313_v53 = vld [vmem:[%s1248_s6 + $0x98] sm:$0xff]  ;;  %v312_v55 = vld [vmem:[%s1248_s6 + $0x90] sm:$0xff]  ;;  %v299_v56 = vld [vmem:[%s1248_s6 + $0x28] sm:$0xff] }
  0x69   : > { %v315_v57 = vld [vmem:[%s1248_s6 + $0xa8] sm:$0xff]  ;;  %v298_v58 = vld [vmem:[%s1248_s6 + $0x20] sm:$0xff]  ;;  %v301_v60 = vld [vmem:[%s1248_s6 + $0x38] sm:$0xff] }
  0x6a   : > { %v314_v59 = vld [vmem:[%s1248_s6 + $0xa0] sm:$0xff]  ;;  %v317_v61 = vld [vmem:[%s1248_s6 + $0xb8] sm:$0xff]  ;;  %v300_v62 = vld [vmem:[%s1248_s6 + $0x30] sm:$0xff] }
  0x6b   : > { %804 = vmatpush3.bf16.msra.mxu0 %v803_v27  ;;  %832 = vmatpush3.bf16.msra.mxu1 %v803_v27  ;;  %v316_v63 = vld [vmem:[%s1248_s6 + $0xb0] sm:$0xff]  ;;  %v303_v0 = vld [vmem:[%s1248_s6 + $0x48] sm:$0xff]  ;;  %v302_v2 = vld [vmem:[%s1248_s6 + $0x40] sm:$0xff] }
  0x6c   : > { %806 = vmatprep.subr.bf16.mxu0 %v805_v28  ;;  %825 = vmatprep.subr.bf16.mxu1 %v805_v28  ;;  %v319_v1 = vld [vmem:[%s1248_s6 + $0xc8] sm:$0xff]  ;;  %v318_v3 = vld [vmem:[%s1248_s6 + $0xc0] sm:$0xff]  ;;  %v305_v4 = vld [vmem:[%s1248_s6 + $0x58] sm:$0xff] }
  0x6d   : > { %v321_v5 = vld [vmem:[%s1248_s6 + $0xd8] sm:$0xff]  ;;  %v304_v6 = vld [vmem:[%s1248_s6 + $0x50] sm:$0xff]  ;;  %v307_v8 = vld [vmem:[%s1248_s6 + $0x68] sm:$0xff] }
  0x6e   : > { %v320_v7 = vld [vmem:[%s1248_s6 + $0xd0] sm:$0xff]  ;;  %v323_v9 = vld [vmem:[%s1248_s6 + $0xe8] sm:$0xff]  ;;  %v306_v10 = vld [vmem:[%s1248_s6 + $0x60] sm:$0xff] }
  0x6f   : > { %808 = vmatpush3.bf16.msra.mxu0 %v807_v33  ;;  %833 = vmatpush3.bf16.msra.mxu1 %v807_v33  ;;  %v322_v11 = vld [vmem:[%s1248_s6 + $0xe0] sm:$0xff]  ;;  %v309_v12 = vld [vmem:[%s1248_s6 + $0x78] sm:$0xff]  ;;  %v308_v14 = vld [vmem:[%s1248_s6 + $0x70] sm:$0xff] }
  0x70   : > { %810 = vmatprep.subr.bf16.mxu0 %v809_v34  ;;  %826 = vmatprep.subr.bf16.mxu1 %v809_v34  ;;  %v325_v13 = vld [vmem:[%s1248_s6 + $0xf8] sm:$0xff]  ;;  %v324_v15 = vld [vmem:[%s1248_s6 + $0xf0] sm:$0xff]  ;;  %v1293_v22 = vld [vmem:[%s1388_s2] ss:$0 sm:$0xff] }
  0x73   : > { %812 = vmatpush3.bf16.msra.mxu0 %v811_v39  ;;  %834 = vmatpush3.bf16.msra.mxu1 %v811_v39 }
  0x74   : > { %814 = vmatprep.subr.bf16.mxu0 %v813_v40  ;;  %827 = vmatprep.subr.bf16.mxu1 %v813_v40 }
  0x77   : > { %816 = vmatpush3.bf16.msra.mxu0 %v815_v45  ;;  %835 = vmatpush3.bf16.msra.mxu1 %v815_v45 }
  0x78   : > { %818 = vmatprep.subr.bf16.mxu0 %v817_v46  ;;  %828 = vmatprep.subr.bf16.mxu1 %v817_v46 }
  0x7b   : > { %820 = vmatpush3.bf16.msra.mxu0 %v819_v49  ;;  %836 = vmatpush3.bf16.msra.mxu1 %v819_v49 }
  0x7e   : > { %391 = vmatmul.mubr.f32.vlgmr.msra.gmra.mrb[0].mxu0 %v294_v50  ;;  %431 = vmatmul.mubr.f32.vlgmr.msra.gmra.mrb[0].mxu1 %v310_v51 }
  0x7f   : > { %395 = vmatprep.mubr.f32.mxu0 %v297_v52  ;;  %435 = vmatprep.mubr.f32.mxu1 %v313_v53 }
  0x82   : > { %396 = vmatmul.mubr.f32.gmra.mrb[2].mxu0 %v296_v54  ;;  %436 = vmatmul.mubr.f32.gmra.mrb[2].mxu1 %v312_v55 }
  0x83   : > { %400 = vmatprep.mubr.f32.mxu0 %v299_v56  ;;  %440 = vmatprep.mubr.f32.mxu1 %v315_v57 }
  0x86   : > { %401 = vmatmul.mubr.f32.gmra.mrb[4].mxu0 %v298_v58  ;;  %441 = vmatmul.mubr.f32.gmra.mrb[4].mxu1 %v314_v59 }
  0x87   : > { %405 = vmatprep.mubr.f32.mxu0 %v301_v60  ;;  %445 = vmatprep.mubr.f32.mxu1 %v317_v61 }
  0x8a   : > { %406 = vmatmul.mubr.f32.gmra.mrb[6].mxu0 %v300_v62  ;;  %446 = vmatmul.mubr.f32.gmra.mrb[6].mxu1 %v316_v63 }
  0x8b   : > { %410 = vmatprep.mubr.f32.mxu0 %v303_v0  ;;  %450 = vmatprep.mubr.f32.mxu1 %v319_v1 }
  0x8e   : > { %411 = vmatmul.mubr.f32.gmra.mrb[8].mxu0 %v302_v2  ;;  %451 = vmatmul.mubr.f32.gmra.mrb[8].mxu1 %v318_v3 }
  0x8f   : > { %415 = vmatprep.mubr.f32.mxu0 %v305_v4  ;;  %455 = vmatprep.mubr.f32.mxu1 %v321_v5 }
  0x92   : > { %416 = vmatmul.mubr.f32.gmra.mrb[10].mxu0 %v304_v6  ;;  %456 = vmatmul.mubr.f32.gmra.mrb[10].mxu1 %v320_v7 }
  0x93   : > { %420 = vmatprep.mubr.f32.mxu0 %v307_v8  ;;  %460 = vmatprep.mubr.f32.mxu1 %v323_v9 }
  0x96   : > { %421 = vmatmul.mubr.f32.gmra.mrb[12].mxu0 %v306_v10  ;;  %461 = vmatmul.mubr.f32.gmra.mrb[12].mxu1 %v322_v11 }
  0x97   : > { %425 = vmatprep.mubr.f32.mxu0 %v309_v12  ;;  %465 = vmatprep.mubr.f32.mxu1 %v325_v13 }
  0x9a   : > { %426 = vmatmul.mubr.f32.gmra.mrb[14].mxu0 %v308_v14  ;;  %466 = vmatmul.mubr.f32.gmra.mrb[14].mxu1 %v324_v15 }
 0x151   : > { %v741_v16 = vpop.f32.mrb[0].mxu0  ;;  %v765_v17 = vpop.f32.mrb[0].mxu1 }
 0x152   : > { %v742_v18 = vpop.f32.mrb[1].mxu0  ;;  %v766_v19 = vpop.f32.mrb[1].mxu1 }
 0x153   : > { %v743_v20 = vadd.f32 %v742_v18, %v741_v16  ;;  %v767_v21 = vadd.f32 %v766_v19, %v765_v17 }
 0x155   : > { %v744_v23 = vpop.f32.mrb[2].mxu0  ;;  %v768_v24 = vpop.f32.mrb[2].mxu1  ;;  %v529_v27 = vadd.f32 %v743_v20, %v1293_v22  ;;  %v537_v28 = vadd.f32 %v767_v21, %v1293_v22 }
 0x156   : > { %v745_v25 = vpop.f32.mrb[3].mxu0  ;;  %v769_v26 = vpop.f32.mrb[3].mxu1 }
 0x157   : > { %v746_v29 = vadd.f32 %v745_v25, %v744_v23  ;;  %v770_v30 = vadd.f32 %v769_v26, %v768_v24  ;;  %v545_v31 = vmax.f32 %v529_v27, 0.0  ;;  %v553_v32 = vmax.f32 %v537_v28, 0.0 }
 0x159   : > { %v747_v33 = vpop.f32.mrb[4].mxu0  ;;  %v771_v34 = vpop.f32.mrb[4].mxu1  ;;  %561 = vst [vmem:[%s1298_s9] sm:$0xff] %v545_v31  ;;  %569 = vst [vmem:[%s1298_s9 + $0x40] sm:$0xff] %v553_v32  ;;  %v530_v37 = vadd.f32 %v746_v29, %v1293_v22  ;;  %v538_v38 = vadd.f32 %v770_v30, %v1293_v22 }
 0x15a   : > { %v748_v35 = vpop.f32.mrb[5].mxu0  ;;  %v772_v36 = vpop.f32.mrb[5].mxu1 }
 0x15b   : > { %v749_v39 = vadd.f32 %v748_v35, %v747_v33  ;;  %v773_v40 = vadd.f32 %v772_v36, %v771_v34  ;;  %v546_v41 = vmax.f32 %v530_v37, 0.0  ;;  %v554_v42 = vmax.f32 %v538_v38, 0.0 }
 0x15d   : > { %v750_v43 = vpop.f32.mrb[6].mxu0  ;;  %v774_v44 = vpop.f32.mrb[6].mxu1  ;;  %562 = vst [vmem:[%s1298_s9 + $0x8] sm:$0xff] %v546_v41  ;;  %570 = vst [vmem:[%s1298_s9 + $0x48] sm:$0xff] %v554_v42  ;;  %v531_v47 = vadd.f32 %v749_v39, %v1293_v22  ;;  %v539_v48 = vadd.f32 %v773_v40, %v1293_v22 }
 0x15e   : > { %v751_v45 = vpop.f32.mrb[7].mxu0  ;;  %v775_v46 = vpop.f32.mrb[7].mxu1 }
 0x15f   : > { %v752_v49 = vadd.f32 %v751_v45, %v750_v43  ;;  %v776_v50 = vadd.f32 %v775_v46, %v774_v44  ;;  %v547_v51 = vmax.f32 %v531_v47, 0.0  ;;  %v555_v52 = vmax.f32 %v539_v48, 0.0 }
 0x161   : > { %v753_v53 = vpop.f32.mrb[8].mxu0  ;;  %v777_v54 = vpop.f32.mrb[8].mxu1  ;;  %563 = vst [vmem:[%s1298_s9 + $0x10] sm:$0xff] %v547_v51  ;;  %571 = vst [vmem:[%s1298_s9 + $0x50] sm:$0xff] %v555_v52  ;;  %v532_v57 = vadd.f32 %v752_v49, %v1293_v22  ;;  %v540_v58 = vadd.f32 %v776_v50, %v1293_v22 }
 0x162   : > { %v754_v55 = vpop.f32.mrb[9].mxu0  ;;  %v778_v56 = vpop.f32.mrb[9].mxu1 }
 0x163   : > { %v755_v59 = vadd.f32 %v754_v55, %v753_v53  ;;  %v779_v60 = vadd.f32 %v778_v56, %v777_v54  ;;  %v548_v61 = vmax.f32 %v532_v57, 0.0  ;;  %v556_v62 = vmax.f32 %v540_v58, 0.0 }
 0x165   : > { %v756_v63 = vpop.f32.mrb[10].mxu0  ;;  %v780_v0 = vpop.f32.mrb[10].mxu1  ;;  %564 = vst [vmem:[%s1298_s9 + $0x18] sm:$0xff] %v548_v61  ;;  %572 = vst [vmem:[%s1298_s9 + $0x58] sm:$0xff] %v556_v62  ;;  %v533_v3 = vadd.f32 %v755_v59, %v1293_v22  ;;  %v541_v4 = vadd.f32 %v779_v60, %v1293_v22 }
 0x166   : > { %v757_v1 = vpop.f32.mrb[11].mxu0  ;;  %v781_v2 = vpop.f32.mrb[11].mxu1 }
 0x167   : > { %v758_v5 = vadd.f32 %v757_v1, %v756_v63  ;;  %v782_v6 = vadd.f32 %v781_v2, %v780_v0  ;;  %v549_v7 = vmax.f32 %v533_v3, 0.0  ;;  %v557_v8 = vmax.f32 %v541_v4, 0.0 }
 0x169   : > { %v759_v9 = vpop.f32.mrb[12].mxu0  ;;  %v783_v10 = vpop.f32.mrb[12].mxu1  ;;  %565 = vst [vmem:[%s1298_s9 + $0x20] sm:$0xff] %v549_v7  ;;  %573 = vst [vmem:[%s1298_s9 + $0x60] sm:$0xff] %v557_v8  ;;  %v534_v13 = vadd.f32 %v758_v5, %v1293_v22  ;;  %v542_v14 = vadd.f32 %v782_v6, %v1293_v22 }
 0x16a   : > { %v760_v11 = vpop.f32.mrb[13].mxu0  ;;  %v784_v12 = vpop.f32.mrb[13].mxu1 }
 0x16b   : > { %v761_v15 = vadd.f32 %v760_v11, %v759_v9  ;;  %v785_v16 = vadd.f32 %v784_v12, %v783_v10  ;;  %v550_v17 = vmax.f32 %v534_v13, 0.0  ;;  %v558_v18 = vmax.f32 %v542_v14, 0.0 }
 0x16d   : > { %v762_v19 = vpop.f32.mrb[14].mxu0  ;;  %v786_v20 = vpop.f32.mrb[14].mxu1  ;;  %566 = vst [vmem:[%s1298_s9 + $0x28] sm:$0xff] %v550_v17  ;;  %574 = vst [vmem:[%s1298_s9 + $0x68] sm:$0xff] %v558_v18  ;;  %v535_v24 = vadd.f32 %v761_v15, %v1293_v22  ;;  %v543_v25 = vadd.f32 %v785_v16, %v1293_v22 }
 0x16e   : > { %v763_v21 = vpop.f32.mrb[15].mxu0  ;;  %v787_v23 = vpop.f32.mrb[15].mxu1 }
 0x16f   : > { %v764_v26 = vadd.f32 %v763_v21, %v762_v19  ;;  %v788_v27 = vadd.f32 %v787_v23, %v786_v20  ;;  %v551_v28 = vmax.f32 %v535_v24, 0.0  ;;  %v559_v29 = vmax.f32 %v543_v25, 0.0 }
 0x171   : > { %567 = vst [vmem:[%s1298_s9 + $0x30] sm:$0xff] %v551_v28  ;;  %575 = vst [vmem:[%s1298_s9 + $0x70] sm:$0xff] %v559_v29  ;;  %v536_v30 = vadd.f32 %v764_v26, %v1293_v22  ;;  %v544_v31 = vadd.f32 %v788_v27, %v1293_v22 }
 0x173   : > { %v552_v32 = vmax.f32 %v536_v30, 0.0  ;;  %v560_v33 = vmax.f32 %v544_v31, 0.0 }
 0x175   : > { %568 = vst [vmem:[%s1298_s9 + $0x38] sm:$0xff] %v552_v32  ;;  %576 = vst [vmem:[%s1298_s9 + $0x78] sm:$0xff] %v560_v33 }
 0x176   : > { %988 = shalt.err (!%p985_p5)
}
 0x177   : > { %s989_s29 = scalar_lea.hbm %s1333_s7, 2048  ;;  %s993_s20 = scalar_lea.hbm %s1389_s3, 4096 }
 0x178   : > { %p990_p9 = scmp.ne.s32.totalorder %s1333_s7, %s989_s29  ;;  %p994_p3 = scmp.lt.u32.totalorder %s1333_s7, %s1389_s3 }
 0x179   : > { %p995_p7 = scmp.lt.u32.totalorder %s993_s20, %s989_s29  ;;  %p997_p4 = scmp.lt.u32.totalorder %s989_s29, %s1333_s7 }
 0x17a   : > { %p991_p1 = pnand %p990_p9, %p1188_p10 }
 0x17b   : > { %p996_p13 = por %p995_p7, %p994_p3 }
 0x17c   : > { %p992_p2 = pneg %p991_p1 }
 0x17d   : > { %p998_p6 = por %p997_p4, %p996_p13 }
 0x17f   : > { %p999_p8 = pnand %p998_p6, %p992_p2 }
 0x181   : > { %1002 = shalt.err (!%p999_p8)
}
 0x182   : > { %s1070_s9 = smov 128   ;;  %s1071_s10 = smov 8  }
 0x183   : > { %843 = dma.vmem_to_hbm [thread:$0]  (%p1188_p10), %s1335_s11, 2048, %s1333_s7, %s578_s15, %s1070_s9, %s1070_s9, %s1071_s10  }
 0x184 PF: > { %s606_s18 = sand.u32 1, %s1041_s12   ;;  %p1407_p12 = scmp.ne.s32.totalorder %s1397_s23, 0 }
 0x185   : > { %p1408_p11 = scmp.ge.s32.totalorder %s1061_s17, 2  ;;  %s607_s26 = scalar_lea.sflag [#allocation4], %s606_s18 }
 0x187   : > { %p854_p0 = pnand %p1408_p11, %p1407_p12 }
 0x189   : > { %1036 = dma.done.wait (!%p854_p0), %s607_s26, 2048  }
 0x18a   : > { %1038 = vsyncadd (!%p854_p0), %s607_s26, 4294965248  ;;  %s20_s17 = sadd.s32 1, %s1061_s17   ;;  %s1409_s12 = smov %s1045_s13 }
 0x18b   : > { %p17_p5 = scmp.ge.s32.totalorder %s20_s17, 4   ;;  %s1410_s13 = smov %s1049_s14 }
 0x18c   : > { %s1411_s14 = smov %s1197_s5  ;;  %s1412_s15 = smov %s1057_s16 }
 0x18d   : > { %s1413_s16 = smov %s1415_s28  ;;  %19 = sbr.rel (!%p17_p5) target bundleno = 7 (0x7), region = 90 }
 0x194   :  { %612 = vsyncpa [#allocation3], 1 }
 0x195   :  { %614 = vsyncpa [#allocation3 + $0x1], 1 }
 0x196   :  { %615 = vsyncpa [#allocation6], 1 }
 0x197   :  { %616 = vsyncpa [#allocation4], 1 }
 0x198   :  { %618 = vsyncpa [#allocation4 + $0x1], 1 }

</bundles_post_ra>
